<compile_context>
chip_gen: v7x
topology: tpu7x:2x2x1
jax: 0.10.0
libtpu: 0.0.40
codegen_flags: <defaults>
</compile_context>

<pallas_src>
import jax
import jax.numpy as jnp
from jax.experimental import pallas as pl
from jax.experimental.pallas import tpu as pltpu


def _softmax_const_kernel(x_ref, out_ref):
    # x_ref:   (TM, V)    tile of flattened (batch*seq, vocab) logits
    # out_ref: (TM, V+1)  fused output: [:, :V] = softmax(x), [:, V] = sum(exp(x))
    V = x_ref.shape[-1]
    x = x_ref[...].astype(jnp.float32)

    # Numerically-stable softmax over the last (lane) axis.
    m = jnp.max(x, axis=-1, keepdims=True)
    e = jnp.exp(x - m)
    denom = jnp.sum(e, axis=-1, keepdims=True)

    # Exact division (per-row scalar denom) -- cheap, and matches the reference
    # to float32 precision (the approx EUP reciprocal did not).
    out_ref[:, :V] = (e / denom).astype(out_ref.dtype)

    # Normalizing constant without a second full-tile exp:
    #   sum(exp(x)) = exp(m) * sum(exp(x - m)).
    out_ref[:, V:] = (denom * jnp.exp(m)).astype(out_ref.dtype)


def _round_up(n, m):
    return -(-n // m) * m


def softmax_forward(x, *, tile_rows=None):
    """Pallas implementation of SoftMax.forward (decoder == identity).

    x: (B, S, V)  ->  (B, S, V+1)  where out[..., :V] = softmax(x, -1)
                                         out[...,  V] = sum(exp(x), -1)
    """
    B, S, V = x.shape
    rows = B * S
    itemsize = jnp.dtype(x.dtype).itemsize

    # Per-core VMEM capacity; fall back to the smallest generation (v7x: 64 MiB).
    try:
        vmem_cap = int(pltpu.get_tpu_info().vmem_capacity_bytes)
    except Exception:
        vmem_cap = 64 << 20

    # Per-step working-set budget: leave headroom for compiler internal scratch.
    ws_budget = max(8 << 20, min(vmem_cap - (16 << 20), 80 << 20))

    if tile_rows is None:
        # Live VMEM bytes per tile row:
        #   double-buffered input block : 2 * V * itemsize
        #   double-buffered output block: 2 * (V+1) * itemsize
        #   f32 intermediates (x_f32, e): 2 * V * 4
        per_row = 2 * V * itemsize + 2 * (V + 1) * itemsize + 2 * V * 4
        tr = max(8, (ws_budget // per_row) // 8 * 8)
        # Cap the raw input block at ~8 MiB (HBM roofline is saturated well before).
        tr = min(tr, max(8, ((8 << 20) // max(V * itemsize, 1)) // 8 * 8))
        # Keep >= 4 grid steps when possible (megacore sharding + pipelining).
        quarter_rows = _round_up(max(-(-rows // 4), 1), 8)
        tile_rows = max(8, min(tr, quarter_rows))
    assert tile_rows % 8 == 0, "tile_rows must be a multiple of 8"

    grid = (pl.cdiv(rows, tile_rows),)

    # VMEM limit from the real working set (double-buffered blocks + f32
    # intermediates + headroom), clamped to the chip capacity.
    in_block = tile_rows * V * itemsize
    out_block = tile_rows * (V + 1) * itemsize
    interm = 2 * tile_rows * V * 4
    needed = 2 * (in_block + out_block) + interm + (2 << 20)
    vmem_bytes = int(min(max(vmem_cap - (8 << 20), 16 << 20),
                         max(16 << 20, needed)))

    xf = x.reshape(rows, V)

    out = pl.pallas_call(
        _softmax_const_kernel,
        out_shape=jax.ShapeDtypeStruct((rows, V + 1), x.dtype),
        grid=grid,
        in_specs=[pl.BlockSpec((tile_rows, V), lambda i: (i, 0))],
        out_specs=pl.BlockSpec((tile_rows, V + 1), lambda i: (i, 0)),
        compiler_params=pltpu.CompilerParams(
            dimension_semantics=("parallel",),
            vmem_limit_bytes=vmem_bytes,
        ),
    )(xf)

    return out.reshape(B, S, V + 1)


def _reference_forward(x):
    # Pure-JAX reference mirroring the per-step torch loop.
    xf = x.astype(jnp.float32)
    probs = jax.nn.softmax(xf, axis=-1)
    const = jnp.sum(jnp.exp(xf), axis=-1, keepdims=True)
    return jnp.concatenate([probs, const], axis=-1).astype(x.dtype)


if __name__ == "__main__":
    key = jax.random.PRNGKey(0)

    # Small shapes consistent with the module: batch=2, seq=8, vocab=32.
    B, S, V = 2, 8, 32
    x = jax.random.normal(key, (B, S, V), dtype=jnp.float32)

    out = jax.block_until_ready(softmax_forward(x))
    ref = _reference_forward(x)

    assert out.shape == (B, S, V + 1), out.shape
    assert jnp.allclose(out[..., :V], ref[..., :V], rtol=1e-4, atol=1e-6), \
        "probs mismatch vs reference"
    assert jnp.allclose(out[..., V], ref[..., V], rtol=1e-4, atol=1e-6), \
        "constant mismatch vs reference"

    # Ragged row count (B*S not a multiple of the row tile) exercises the
    # partial final block (no wrapper-side padding).
    x2 = jax.random.normal(jax.random.PRNGKey(1), (3, 5, 160), dtype=jnp.float32)
    out2 = jax.block_until_ready(softmax_forward(x2))
    ref2 = _reference_forward(x2)
    assert out2.shape == (3, 5, 161), out2.shape
    assert jnp.allclose(out2[..., :160], ref2[..., :160], rtol=1e-4, atol=1e-6)
    assert jnp.allclose(out2[..., 160], ref2[..., 160], rtol=1e-4, atol=1e-6)

    print("KERNEL_OK")
</pallas_src>

<mosaic_0001>
module attributes {stable_mosaic.version = 11 : i64} {
  func.func @_softmax_const_kernel(%arg0: i32, %arg1: memref<8x32xf32, #tpu.memory_space<vmem>>, %arg2: memref<8x33xf32, #tpu.memory_space<vmem>>) attributes {dimension_semantics = [#tpu.dimension_semantics<parallel>], iteration_bounds = array<i64: 2>, scalar_prefetch = 0 : i64, scratch_operands = 0 : i64, tpu.core_type = #tpu.core_type<tc>, window_params = [{transform_indices = @transform_0, window_bounds = array<i64: 8, 32>}, {transform_indices = @transform_1, window_bounds = array<i64: 8, 33>}]} {
    %c0 = arith.constant 0 : index
    %c0_0 = arith.constant 0 : index
    %0 = vector.load %arg1[%c0, %c0_0] : memref<8x32xf32, #tpu.memory_space<vmem>>, vector<8x32xf32>
    %cst = arith.constant dense<0xFF800000> : vector<8xf32>
    %1 = vector.multi_reduction <maximumf>, %0, %cst [1] : vector<8x32xf32> to vector<8xf32>
    %2 = vector.shape_cast %1 : vector<8xf32> to vector<8x1xf32>
    %3 = vector.broadcast %2 : vector<8x1xf32> to vector<8x32xf32>
    %4 = arith.subf %0, %3 : vector<8x32xf32>
    %5 = math.exp %4 : vector<8x32xf32>
    %cst_1 = arith.constant dense<0.000000e+00> : vector<8xf32>
    %6 = vector.multi_reduction <add>, %5, %cst_1 [1] : vector<8x32xf32> to vector<8xf32>
    %7 = vector.shape_cast %6 : vector<8xf32> to vector<8x1xf32>
    %8 = vector.broadcast %7 : vector<8x1xf32> to vector<8x32xf32>
    %9 = arith.divf %5, %8 : vector<8x32xf32>
    %c0_2 = arith.constant 0 : index
    %c0_3 = arith.constant 0 : index
    %10 = vector.load %arg2[%c0_2, %c0_3] : memref<8x33xf32, #tpu.memory_space<vmem>>, vector<8x32xf32>
    tpu.vector_store %arg2[%c0_2, %c0_3], %9 {strides = array<i32>} : memref<8x33xf32, #tpu.memory_space<vmem>>, vector<8x32xf32>,
    %11 = math.exp %2 : vector<8x1xf32>
    %12 = arith.mulf %7, %11 : vector<8x1xf32>
    %c0_4 = arith.constant 0 : index
    %c32 = arith.constant 32 : index
    %13 = vector.load %arg2[%c0_4, %c32] : memref<8x33xf32, #tpu.memory_space<vmem>>, vector<8x1xf32>
    tpu.vector_store %arg2[%c0_4, %c32], %12 {strides = array<i32>} : memref<8x33xf32, #tpu.memory_space<vmem>>, vector<8x1xf32>,
    return
  }
  func.func @transform_0(%arg0: i32) -> (i32, i32) {
    %c0_i32 = arith.constant 0 : i32
    %c0_i32_0 = arith.constant 0 : i32
    return %arg0, %c0_i32 : i32, i32
  }
  func.func @transform_1(%arg0: i32) -> (i32, i32) {
    %c0_i32 = arith.constant 0 : i32
    %c0_i32_0 = arith.constant 0 : i32
    return %arg0, %c0_i32 : i32, i32
  }
}

</mosaic_0001>

<bundles_post_ra>
// kernel: tpu_custom_call.1
= control target key start
LH: loop header
LB: loop body
LE: loop exit
PB: predicated region body
PF: predicated region fallthrough
CT: control target
= control target key end

     0   :  { %6 = vsyncpa [#allocation3], 0  ;;  %s573_s0 = inlined_call_operand.hbm [shape: f32[16,32], index: 0, kind: input, shape index: {}]   ;;  %s574_s1 = inlined_call_operand.hbm [shape: f32[16,33], index: 1, kind: output, shape index: {}]  }
   0x1   :  { %8 = vsyncpa [#allocation3 + $0x1], 0 }
   0x2   :  { %9 = vsyncpa [#allocation4], 0 }
   0x3   :  { %11 = vsyncpa [#allocation4 + $0x1], 0  ;;  %s409_s6 = smov 0   ;;  %s411_s7 = smov 0  }
   0x4   :  { %s413_s8 = smov 0   ;;  %s415_s9 = smov 0  }
   0x5 LB: > { %s430_s10 = sadd.s32 4294967295, %s395_s9   ;;  %s235_s11 = sadd.s32 4294967294, %s395_s9   ;;  %s395_s9 = sphi %s415_s9, %s589_s9   ;;  %s391_s8 = sphi %s413_s8, %s588_s8   ;;  %s387_s7 = sphi %s411_s7, %s587_s7   ;;  %s383_s6 = sphi %s409_s6, %s586_s6  }
   0x6   : > { %s434_s12 = sadd.s32 1, %s395_s9   ;;  %s24_s13 = sadd.s32 1, %s391_s8 }
   0x7   : > { %s21_s14 = ssub.s32 %s395_s9, %s434_s12  ;;  %p31_p0 = scmp.ne.s32.totalorder %s391_s8, %s387_s7 }
   0x8   : > { %p22_p1 = scmp.eq.s32.totalorder %s21_s14, 0  ;;  %p32_p2 = scmp.eq.s32.totalorder %s395_s9, 0 }
   0x9   : > { %p37_p3 = scmp.ne.s32.totalorder %s387_s7, %s383_s6  ;;  %p38_p4 = scmp.eq.s32.totalorder %s430_s10, 0 }
   0xa   : > { %s446_s15 = scalar_select %p22_p1, %s391_s8, %s24_s13  }
   0xb   : > { %p448_p5 = por %p32_p2, %p31_p0  ;;  %p452_p6 = por %p38_p4, %p37_p3 }
   0xc   : > { %p61_p7 = scmp.eq.s32.totalorder %s430_s10, 1  ;;  %p67_p8 = scmp.eq.s32.totalorder %s235_s11, 1 }
   0xd   : > { %p259_p10 = scmp.lt.s32.totalorder %s395_s9, 2  ;;  %s87_s20 = sand.u32 1, %s391_s8  }
   0xe   : > { %p459_p11 = por %p61_p7, %p31_p0  ;;  %p463_p12 = por %p67_p8, %p37_p3 }
   0xf   : > { %s239_s21 = sshll.u32 %s395_s9, 7  ;;  %s238_s22 = sshll.u32 %s87_s20, 3 }
  0x10   : > { %s578_s18 = scalar_select %p459_p11, 1, 0 }
  0x11   : > { %s579_s19 = scalar_select %p463_p12, 1, 0 }
  0x12   : > { %s472_s25 = scalar_lea.hbm %s573_s0, %s239_s21  ;;  %s91_s26 = scalar_lea.vmem [#allocation2], %s238_s22 }
  0x13   : > { %s98_s27 = sshll.u32 %s91_s26, 4  ;;  %p476_p13 = pnand %p259_p10, %p448_p5  ;;  %s480_s27 = int_to_ptr.vmem [resolvable:$true] %s98_s27 }
  0x14   : > { %s88_s29 = scalar_lea.sflag [#allocation3], %s87_s20  ;;  %s299_s30 = scalar_lea.hbm %s472_s25, 128 }
  0x15   : > { %p300_p2 = scmp.ne.s32.totalorder %s472_s25, %s299_s30  ;;  %p301_p3 = pneg %p476_p13 }
  0x16   : > { %s304_s4 = scalar_lea.hbm %s573_s0, 256  ;;  %p305_p5 = scmp.lt.u32.totalorder %s472_s25, %s573_s0 }
  0x17   : > { %p302_p4 = pnand %p301_p3, %p300_p2  ;;  %p306_p8 = scmp.lt.u32.totalorder %s304_s4, %s299_s30 }
  0x18   : > { %p308_p9 = scmp.lt.u32.totalorder %s299_s30, %s472_s25 }
  0x19   : > { %p303_p7 = pneg %p302_p4  ;;  %p307_p10 = por %p306_p8, %p305_p5 }
  0x1b   : > { %p309_p0 = por %p308_p9, %p307_p10 }
  0x1d   : > { %p310_p1 = pnand %p309_p0, %p303_p7 }
  0x1f   : > { %313 = shalt.err (!%p310_p1)
}
  0x20   : > { %s314_s13 = scalar_lea.vmem %s480_s27, 128  ;;  %s397_s14 = smov [#allocation2]  }
  0x21   : > { %p315_p2 = scmp.ne.s32.totalorder %s480_s27, %s314_s13  ;;  %s319_s16 = sshll.u32 %s397_s14, 4  ;;  %s320_s16 = int_to_ptr.vmem [resolvable:$false] %s319_s16 }
  0x22   : > { %s321_s20 = scalar_lea.vmem %s320_s16, 256  ;;  %p322_p11 = scmp.lt.s32.totalorder %s480_s27, %s320_s16 }
  0x23   : > { %p317_p4 = pnand %p315_p2, %p301_p3  ;;  %p323_p5 = scmp.lt.s32.totalorder %s321_s20, %s314_s13 }
  0x25   : > { %p318_p12 = pneg %p317_p4  ;;  %p324_p8 = por %p323_p5, %p322_p11 }
  0x27   : > { %p325_p9 = pnand %p324_p8, %p318_p12 }
  0x29   : > { %328 = shalt.err (!%p325_p9)
}
  0x2a   : > { %254 = dma.hbm_to_vmem [thread:$0]  (!%p476_p13), %s472_s25, 128, %s480_s27, %s88_s29  }
  0x2b   : > { %p581_p0 = scmp.lt.s32.totalorder %s395_s9, 3  ;;  %p582_p1 = scmp.ge.s32.totalorder %s395_s9, 1 }
  0x2d   : > { %p104_p3 = pnand %p582_p1, %p581_p0 }
  0x2e   : > { %s514_s21 = sand.u32 (!%p104_p3), 1, %s387_s7  }
  0x2f   : > { %107 = sbr.rel (%p104_p3) target bundleno = 385 (0x181), region = 24  ;;  %s241_s22 = sshll.u32 (!%p104_p3), %s514_s21, 3 }
  0x30   : > { %s110_s23 = scalar_lea.sflag (!%p104_p3), [#allocation3], %s514_s21  ;;  %s113_s24 = scalar_lea.vmem (!%p104_p3), [#allocation2], %s241_s22 }
  0x36   : > { %374 = dma.done.wait (%p452_p6), %s110_s23, 128  }
  0x37   : > { %376 = vsyncadd (%p452_p6), %s110_s23, 4294967168  ;;  %vm133_vm0 = vcmask 261120   ;;  %v132_v0 = vld [vmem:[%s113_s24] sm:$0xff]  ;;  %s244_s17 = sshll.u32 %s430_s10, 7  ;;  %s131_s25 = scalar_lea.vmem [#allocation5], %s241_s22  ;;  %vm149_vm1 = vcmask 269568  }
  0x38   : > { %v134_v1 = vsel %vm133_vm0, %v132_v0, -inf  ;;  %s165_s26 = sshll.u32 %s131_s25, 4  ;;  %s528_s29 = scalar_lea.hbm %s574_s1, %s244_s17  ;;  %s530_s26 = int_to_ptr.vmem [resolvable:$true] %s165_s26 }
  0x39   : > { %135 = vmax.xlane.f32.xlu0 %v134_v1  ;;  %s152_s10 = scalar_lea.sflag [#allocation4], %s514_s21  ;;  %s329_s30 = scalar_lea.vmem %s530_s26, 128 }
  0x3a   : > { %p330_p6 = scmp.ne.s32.totalorder %s530_s26, %s329_s30  ;;  %p583_p11 = scmp.ne.s32.totalorder %s578_s18, 0 }
  0x3b   : > { %s398_s2 = smov [#allocation5]  }
  0x3c   : > { %p331_p12 = pnand %p330_p6, %p583_p11  ;;  %s333_s3 = sshll.u32 %s398_s2, 4  ;;  %s334_s3 = int_to_ptr.vmem [resolvable:$false] %s333_s3 }
  0x3d   : > { %s335_s4 = scalar_lea.vmem %s334_s3, 256  ;;  %p336_p7 = scmp.lt.s32.totalorder %s530_s26, %s334_s3 }
  0x3e   : > { %p332_p13 = pneg %p331_p12  ;;  %p337_p10 = scmp.lt.s32.totalorder %s335_s4, %s329_s30 }
  0x40   : > { %p338_p2 = por %p337_p10, %p336_p7 }
  0x42   : > { %p339_p4 = pnand %p338_p2, %p332_p13 }
  0xc6   : > { %v136_v2 = vpop.xlane.xlu0 %135 }
  0xc7   : > { %v137_v3 = vsub.f32 %v132_v0, %v136_v2  ;;  %v146_v7 = vmul.f32 1.442695, %v136_v2 }
  0xc9   : > { %v138_v4 = vmul.f32 1.442695, %v137_v3 }
  0xcb   : > { %293 = vpow2.f32 %v138_v4 }
  0xd5   : > { %v294_v5 = vpop.eup %293 }
  0xd6   : > { %v140_v6 = vsel %vm133_vm0, %v294_v5, 0.0 }
  0xd7   : > { %141 = vadd.xlane.f32.xlu0 %v140_v6 }
 0x164   : > { %v142_v8 = vpop.xlane.xlu0 %141 }
 0x165   : > { %295 = vrcp.f32 %v142_v8 }
 0x166   : > { %297 = vpow2.f32 %v146_v7 }
 0x16f   : > { %v296_v9 = vpop.eup %295 }
 0x170   : > { %v298_v10 = vpop.eup %297  ;;  %v144_v11 = vmul.f32 %v296_v9, %v294_v5 }
 0x171   : > { %v148_v12 = vmul.f32 %v298_v10, %v142_v8 }
 0x172   : > { %145 = vst.msk [vmem:[%s131_s25] sm:$0xff] %vm133_vm0, %v144_v11 }
 0x173   : > { %150 = vst.msk [vmem:[%s131_s25] sm:$0xff] %vm149_vm1, %v148_v12 }
 0x174   : > { %342 = shalt.err (!%p339_p4)
}
 0x175   : > { %s343_s5 = scalar_lea.hbm %s528_s29, 128  ;;  %s347_s14 = scalar_lea.hbm %s574_s1, 256 }
 0x176   : > { %p344_p5 = scmp.ne.s32.totalorder %s528_s29, %s343_s5  ;;  %p348_p0 = scmp.lt.u32.totalorder %s528_s29, %s574_s1 }
 0x177   : > { %p349_p1 = scmp.lt.u32.totalorder %s347_s14, %s343_s5  ;;  %p351_p6 = scmp.lt.u32.totalorder %s343_s5, %s528_s29 }
 0x178   : > { %p345_p8 = pnand %p344_p5, %p583_p11 }
 0x179   : > { %p350_p3 = por %p349_p1, %p348_p0 }
 0x17a   : > { %p346_p9 = pneg %p345_p8 }
 0x17b   : > { %p352_p12 = por %p351_p6, %p350_p3 }
 0x17d   : > { %p353_p13 = pnand %p352_p12, %p346_p9 }
 0x17f   : > { %356 = shalt.err (!%p353_p13)
}
 0x180   : > { %249 = dma.vmem_to_hbm [thread:$0]  (%p583_p11), %s530_s26, 128, %s528_s29, %s152_s10  }
 0x181 PF: > { %s177_s21 = sand.u32 1, %s383_s6   ;;  %p584_p7 = scmp.ne.s32.totalorder %s579_s19, 0 }
 0x182   : > { %p585_p10 = scmp.ge.s32.totalorder %s395_s9, 2  ;;  %s178_s22 = scalar_lea.sflag [#allocation4], %s177_s21 }
 0x184   : > { %p256_p2 = pnand %p585_p10, %p584_p7 }
 0x186   : > { %378 = dma.done.wait (!%p256_p2), %s178_s22, 128  }
 0x187   : > { %380 = vsyncadd (!%p256_p2), %s178_s22, 4294967168  ;;  %p14_p4 = scmp.ge.s32.totalorder %s434_s12, 4   ;;  %s586_s6 = smov %s387_s7 }
 0x188   : > { %s587_s7 = smov %s391_s8  ;;  %s588_s8 = smov %s446_s15 }
 0x189   : > { %s589_s9 = smov %s434_s12  ;;  %16 = sbr.rel (!%p14_p4) target bundleno = 5 (0x5), region = 69 }
 0x190   :  { %183 = vsyncpa [#allocation3], 1 }
 0x191   :  { %185 = vsyncpa [#allocation3 + $0x1], 1 }
 0x192   :  { %186 = vsyncpa [#allocation4], 1 }
 0x193   :  { %188 = vsyncpa [#allocation4 + $0x1], 1 }

</bundles_post_ra>
